<compile_context>
chip_gen: v5e
topology: v5e:2x2
jax: 0.10.0
libtpu: 0.0.40
codegen_flags: <defaults>
</compile_context>

<pallas_src>
import functools

import jax
import jax.numpy as jnp
from jax.experimental import pallas as pl
from jax.experimental.pallas import tpu as pltpu


def _round_up(x, m):
    return ((x + m - 1) // m) * m


def transition_kernel(state_ref, action_ref,
                      w1s_ref, w1a_ref, b1_ref,
                      w2_ref, b2_ref,
                      wh_ref, bh_ref,
                      out_ref, *, state_dim):
    # linear1 (split over state/action instead of a concatenated input) + ReLU
    h1 = (jnp.dot(state_ref[...], w1s_ref[...], preferred_element_type=jnp.float32)
          + jnp.dot(action_ref[...], w1a_ref[...], preferred_element_type=jnp.float32)
          + b1_ref[...])
    h1 = jnp.maximum(h1, 0.0)

    # linear2 (no activation, matches the PyTorch forward)
    h2 = jnp.dot(h1.astype(w2_ref.dtype), w2_ref[...],
                 preferred_element_type=jnp.float32) + b2_ref[...]

    # fused heads: columns [0, S) = mean head, [S, 2S) = stddev head,
    # [2S, out_w) = zero padding (sliced away in the wrapper).
    heads = jnp.dot(h2.astype(wh_ref.dtype), wh_ref[...],
                    preferred_element_type=jnp.float32) + bh_ref[...]

    col = jax.lax.broadcasted_iota(jnp.int32, heads.shape, 1)
    mean_vals = jnp.clip(heads, -1000.0, 1000.0)
    # logaddexp(x, 0) == softplus(x), numerically stable
    std_vals = jnp.clip(jnp.logaddexp(heads, 0.0), 1e-6, 1.0)
    out_ref[...] = jnp.where(col < state_dim, mean_vals, std_vals).astype(out_ref.dtype)


def make_params(key, state_dim, action_dim, hidden_dim):
    """nn.Linear-equivalent params, stored transposed: W has shape (in, out)."""
    def xavier(key, fan_in, fan_out):
        bound = (6.0 / (fan_in + fan_out)) ** 0.5
        return jax.random.uniform(key, (fan_in, fan_out), jnp.float32, -bound, bound)

    def bias(key, fan_in, fan_out):
        bound = 1.0 / (fan_in ** 0.5)
        return jax.random.uniform(key, (1, fan_out), jnp.float32, -bound, bound)

    in_dim = state_dim + action_dim
    ks = jax.random.split(key, 8)
    return dict(
        w1=xavier(ks[0], in_dim, hidden_dim), b1=bias(ks[1], in_dim, hidden_dim),
        w2=xavier(ks[2], hidden_dim, hidden_dim), b2=bias(ks[3], hidden_dim, hidden_dim),
        wm=xavier(ks[4], hidden_dim, state_dim), bm=bias(ks[5], hidden_dim, state_dim),
        ws=xavier(ks[6], hidden_dim, state_dim), bs=bias(ks[7], hidden_dim, state_dim),
    )


def pack_params(params, state_dim, *, compute_dtype=jnp.float32):
    """Kernel-ready layout: split w1, fuse + lane-pad (to 128) the two heads.

    Use compute_dtype=jnp.bfloat16 on v6e/v7x for MXU-native operands (relax the
    correctness tolerance to ~1e-2 if you do); biases stay f32 (added post-acc).
    """
    w1 = params["w1"]
    hidden_dim = w1.shape[1]
    S = state_dim
    out_w = max(_round_up(2 * S, 128), 128)   # lane-dense, unmasked stores

    wh = jnp.zeros((hidden_dim, out_w), jnp.float32)
    wh = wh.at[:, :S].set(params["wm"]).at[:, S:2 * S].set(params["ws"])
    bh = jnp.zeros((1, out_w), jnp.float32)
    bh = bh.at[:, :S].set(params["bm"][0]).at[:, S:2 * S].set(params["bs"][0])

    return dict(
        w1_s=w1[:S].astype(compute_dtype),
        w1_a=w1[S:].astype(compute_dtype),
        b1=params["b1"].astype(jnp.float32),
        w2=params["w2"].astype(compute_dtype),
        b2=params["b2"].astype(jnp.float32),
        wh=wh.astype(compute_dtype),
        bh=bh.astype(jnp.float32),
    )


def transition_model(state, action, packed, *, state_dim, block_batch=512):
    """Fused forward.  Returns (mean, stddev), each (B, state_dim) float32."""
    compute_dtype = packed["w1_s"].dtype
    state = jnp.asarray(state, compute_dtype)
    action = jnp.asarray(action, compute_dtype)

    B, s_dim = state.shape
    a_dim = action.shape[1]
    hidden_dim = packed["w1_s"].shape[1]
    out_w = packed["wh"].shape[1]

    # Batch tile: weights stay VMEM-resident across grid steps; batch tiles are
    # double-buffered by the Pallas pipeline.
    tb = min(block_batch, B)
    grid = (pl.cdiv(B, tb),)

    def batch_spec(width):
        return pl.BlockSpec((tb, width), lambda i: (i, 0))

    def const_spec(shape):
        return pl.BlockSpec(shape, lambda i: (0, 0))

    kernel = functools.partial(transition_kernel, state_dim=state_dim)

    # NOTE(v7x): resident weights = (s+a)*H + H*H + H*out_w floats; at the
    # default hidden_dim=32 this is tiny — re-derive vs. the 64 MiB VMEM budget
    # (and add a K/hidden tiling axis) only if hidden_dim is scaled way up.
    out = pl.pallas_call(
        kernel,
        grid=grid,
        in_specs=[
            batch_spec(s_dim),                      # state  (B, S)
            batch_spec(a_dim),                      # action (B, A)
            const_spec((s_dim, hidden_dim)),        # w1_s
            const_spec((a_dim, hidden_dim)),        # w1_a
            const_spec((1, hidden_dim)),            # b1
            const_spec((hidden_dim, hidden_dim)),   # w2
            const_spec((1, hidden_dim)),            # b2
            const_spec((hidden_dim, out_w)),        # fused+padded head weight
            const_spec((1, out_w)),                 # fused+padded head bias
        ],
        out_specs=batch_spec(out_w),
        out_shape=jax.ShapeDtypeStruct((B, out_w), jnp.float32),
        compiler_params=pltpu.CompilerParams(
            dimension_semantics=("parallel",)),
    )(state, action,
      packed["w1_s"], packed["w1_a"], packed["b1"],
      packed["w2"], packed["b2"],
      packed["wh"], packed["bh"])

    mean = out[:, :state_dim]
    stddev = out[:, state_dim:2 * state_dim]
    return mean, stddev


def transition_model_ref(state, action, params):
    """Pure-JAX reference (un-fused weights) for correctness checking."""
    x = jnp.concatenate([state, action], axis=-1).astype(jnp.float32)
    h1 = jnp.maximum(x @ params["w1"] + params["b1"], 0.0)
    h2 = h1 @ params["w2"] + params["b2"]
    mean = jnp.clip(h2 @ params["wm"] + params["bm"], -1000.0, 1000.0)
    stddev = jnp.clip(jax.nn.softplus(h2 @ params["ws"] + params["bs"]), 1e-6, 1.0)
    return mean, stddev


if __name__ == "__main__":
    state_dim, action_dim, hidden_dim = 8, 4, 32
    batch = 16

    key = jax.random.PRNGKey(0)
    k_params, k_state, k_action = jax.random.split(key, 3)
    params = make_params(k_params, state_dim, action_dim, hidden_dim)
    packed = pack_params(params, state_dim)            # f32 demo (tight tolerance)

    state = jax.random.normal(k_state, (batch, state_dim), jnp.float32)
    action = jax.random.normal(k_action, (batch, action_dim), jnp.float32)

    mean, stddev = jax.block_until_ready(
        transition_model(state, action, packed, state_dim=state_dim))
    mean_ref, stddev_ref = transition_model_ref(state, action, params)

    assert mean.shape == (batch, state_dim) and stddev.shape == (batch, state_dim)
    assert jnp.allclose(mean, mean_ref, atol=1e-5, rtol=1e-5)
    assert jnp.allclose(stddev, stddev_ref, atol=1e-5, rtol=1e-5)
    assert bool(jnp.all(stddev >= 1e-6)) and bool(jnp.all(stddev <= 1.0))

    print("KERNEL_OK")
</pallas_src>

<mosaic_0001>
module attributes {stable_mosaic.version = 11 : i64} {
  func.func @transition_kernel(%arg0: i32, %arg1: memref<16x8xf32, #tpu.memory_space<vmem>>, %arg2: memref<16x4xf32, #tpu.memory_space<vmem>>, %arg3: memref<8x32xf32, #tpu.memory_space<vmem>>, %arg4: memref<4x32xf32, #tpu.memory_space<vmem>>, %arg5: memref<1x32xf32, #tpu.memory_space<vmem>>, %arg6: memref<32x32xf32, #tpu.memory_space<vmem>>, %arg7: memref<1x32xf32, #tpu.memory_space<vmem>>, %arg8: memref<32x128xf32, #tpu.memory_space<vmem>>, %arg9: memref<1x128xf32, #tpu.memory_space<vmem>>, %arg10: memref<16x128xf32, #tpu.memory_space<vmem>>) attributes {dimension_semantics = [#tpu.dimension_semantics<parallel>], iteration_bounds = array<i64: 1>, scalar_prefetch = 0 : i64, scratch_operands = 0 : i64, tpu.core_type = #tpu.core_type<tc>, window_params = [{transform_indices = @transform_0, window_bounds = array<i64: 16, 8>}, {transform_indices = @transform_1, window_bounds = array<i64: 16, 4>}, {pipeline_mode = #tpu.pipeline_mode<synchronous>, transform_indices = @transform_2, window_bounds = array<i64: 8, 32>}, {pipeline_mode = #tpu.pipeline_mode<synchronous>, transform_indices = @transform_3, window_bounds = array<i64: 4, 32>}, {pipeline_mode = #tpu.pipeline_mode<synchronous>, transform_indices = @transform_4, window_bounds = array<i64: 1, 32>}, {pipeline_mode = #tpu.pipeline_mode<synchronous>, transform_indices = @transform_5, window_bounds = array<i64: 32, 32>}, {pipeline_mode = #tpu.pipeline_mode<synchronous>, transform_indices = @transform_6, window_bounds = array<i64: 1, 32>}, {pipeline_mode = #tpu.pipeline_mode<synchronous>, transform_indices = @transform_7, window_bounds = array<i64: 32, 128>}, {pipeline_mode = #tpu.pipeline_mode<synchronous>, transform_indices = @transform_8, window_bounds = array<i64: 1, 128>}, {transform_indices = @transform_9, window_bounds = array<i64: 16, 128>}]} {
    %c0 = arith.constant 0 : index
    %c0_0 = arith.constant 0 : index
    %0 = vector.load %arg1[%c0, %c0_0] : memref<16x8xf32, #tpu.memory_space<vmem>>, vector<16x8xf32>
    %c0_1 = arith.constant 0 : index
    %c0_2 = arith.constant 0 : index
    %1 = vector.load %arg3[%c0_1, %c0_2] : memref<8x32xf32, #tpu.memory_space<vmem>>, vector<8x32xf32>
    %cst = arith.constant dense<0.000000e+00> : vector<16x32xf32>
    %2 = tpu.matmul %0, %1, %cst {dimension_numbers = #tpu.dot_dimension_numbers<[1], [0], [0], [1], [0, 0, 1, 1], [], []>} : vector<16x8xf32>, vector<8x32xf32>, vector<16x32xf32> -> vector<16x32xf32>
    %c0_3 = arith.constant 0 : index
    %c0_4 = arith.constant 0 : index
    %3 = vector.load %arg2[%c0_3, %c0_4] : memref<16x4xf32, #tpu.memory_space<vmem>>, vector<16x4xf32>
    %c0_5 = arith.constant 0 : index
    %c0_6 = arith.constant 0 : index
    %4 = vector.load %arg4[%c0_5, %c0_6] : memref<4x32xf32, #tpu.memory_space<vmem>>, vector<4x32xf32>
    %cst_7 = arith.constant dense<0.000000e+00> : vector<16x32xf32>
    %5 = tpu.matmul %3, %4, %cst_7 {dimension_numbers = #tpu.dot_dimension_numbers<[1], [0], [0], [1], [0, 0, 1, 1], [], []>} : vector<16x4xf32>, vector<4x32xf32>, vector<16x32xf32> -> vector<16x32xf32>
    %6 = arith.addf %2, %5 : vector<16x32xf32>
    %c0_8 = arith.constant 0 : index
    %c0_9 = arith.constant 0 : index
    %7 = vector.load %arg5[%c0_8, %c0_9] : memref<1x32xf32, #tpu.memory_space<vmem>>, vector<1x32xf32>
    %8 = vector.broadcast %7 : vector<1x32xf32> to vector<16x32xf32>
    %9 = arith.addf %6, %8 : vector<16x32xf32>
    %cst_10 = arith.constant 0.000000e+00 : f32
    %10 = vector.broadcast %cst_10 : f32 to vector<16x32xf32>
    %11 = arith.maximumf %9, %10 : vector<16x32xf32>
    %c0_11 = arith.constant 0 : index
    %c0_12 = arith.constant 0 : index
    %12 = vector.load %arg6[%c0_11, %c0_12] : memref<32x32xf32, #tpu.memory_space<vmem>>, vector<32x32xf32>
    %cst_13 = arith.constant dense<0.000000e+00> : vector<16x32xf32>
    %13 = tpu.matmul %11, %12, %cst_13 {dimension_numbers = #tpu.dot_dimension_numbers<[1], [0], [0], [1], [0, 0, 1, 1], [], []>} : vector<16x32xf32>, vector<32x32xf32>, vector<16x32xf32> -> vector<16x32xf32>
    %c0_14 = arith.constant 0 : index
    %c0_15 = arith.constant 0 : index
    %14 = vector.load %arg7[%c0_14, %c0_15] : memref<1x32xf32, #tpu.memory_space<vmem>>, vector<1x32xf32>
    %15 = vector.broadcast %14 : vector<1x32xf32> to vector<16x32xf32>
    %16 = arith.addf %13, %15 : vector<16x32xf32>
    %c0_16 = arith.constant 0 : index
    %c0_17 = arith.constant 0 : index
    %17 = vector.load %arg8[%c0_16, %c0_17] : memref<32x128xf32, #tpu.memory_space<vmem>>, vector<32x128xf32>
    %cst_18 = arith.constant dense<0.000000e+00> : vector<16x128xf32>
    %18 = tpu.matmul %16, %17, %cst_18 {dimension_numbers = #tpu.dot_dimension_numbers<[1], [0], [0], [1], [0, 0, 1, 1], [], []>} : vector<16x32xf32>, vector<32x128xf32>, vector<16x128xf32> -> vector<16x128xf32>
    %c0_19 = arith.constant 0 : index
    %c0_20 = arith.constant 0 : index
    %19 = vector.load %arg9[%c0_19, %c0_20] : memref<1x128xf32, #tpu.memory_space<vmem>>, vector<1x128xf32>
    %20 = vector.broadcast %19 : vector<1x128xf32> to vector<16x128xf32>
    %21 = arith.addf %18, %20 : vector<16x128xf32>
    %22 = tpu.iota {dimensions = array<i32: 1>} : vector<16x128xi32>
    %cst_21 = arith.constant -1.000000e+03 : f32
    %cst_22 = arith.constant 1.000000e+03 : f32
    %23 = vector.broadcast %cst_21 : f32 to vector<16x128xf32>
    %24 = arith.maximumf %23, %21 : vector<16x128xf32>
    %25 = vector.broadcast %cst_22 : f32 to vector<16x128xf32>
    %26 = arith.minimumf %25, %24 : vector<16x128xf32>
    %cst_23 = arith.constant 0.000000e+00 : f32
    %27 = vector.broadcast %cst_23 : f32 to vector<16x128xf32>
    %28 = arith.maximumf %21, %27 : vector<16x128xf32>
    %29 = vector.broadcast %cst_23 : f32 to vector<16x128xf32>
    %30 = arith.subf %21, %29 : vector<16x128xf32>
    %31 = arith.cmpf one, %30, %30 : vector<16x128xf32>
    %32 = vector.broadcast %cst_23 : f32 to vector<16x128xf32>
    %33 = arith.addf %21, %32 : vector<16x128xf32>
    %34 = math.absf %30 : vector<16x128xf32>
    %cst_24 = arith.constant 0.000000e+00 : f32
    %35 = vector.broadcast %cst_24 : f32 to vector<16x128xf32>
    %36 = arith.subf %35, %34 : vector<16x128xf32>
    %37 = math.exp %36 : vector<16x128xf32>
    %38 = math.log1p %37 : vector<16x128xf32>
    %39 = arith.addf %28, %38 : vector<16x128xf32>
    %40 = arith.select %31, %33, %39 : vector<16x128xi1>, vector<16x128xf32>
    %cst_25 = arith.constant 9.99999997E-7 : f32
    %cst_26 = arith.constant 1.000000e+00 : f32
    %41 = vector.broadcast %cst_25 : f32 to vector<16x128xf32>
    %42 = arith.maximumf %41, %40 : vector<16x128xf32>
    %43 = vector.broadcast %cst_26 : f32 to vector<16x128xf32>
    %44 = arith.minimumf %43, %42 : vector<16x128xf32>
    %c8_i32 = arith.constant 8 : i32
    %45 = vector.broadcast %c8_i32 : i32 to vector<16x128xi32>
    %46 = arith.cmpi slt, %22, %45 : vector<16x128xi32>
    %47 = arith.select %46, %26, %44 : vector<16x128xi1>, vector<16x128xf32>
    %c0_27 = arith.constant 0 : index
    %c0_28 = arith.constant 0 : index
    %48 = vector.load %arg10[%c0_27, %c0_28] : memref<16x128xf32, #tpu.memory_space<vmem>>, vector<16x128xf32>
    tpu.vector_store %arg10[%c0_27, %c0_28], %47 {strides = array<i32>} : memref<16x128xf32, #tpu.memory_space<vmem>>, vector<16x128xf32>,
    return
  }
  func.func @transform_0(%arg0: i32) -> (i32, i32) {
    %c0_i32 = arith.constant 0 : i32
    %c0_i32_0 = arith.constant 0 : i32
    return %arg0, %c0_i32 : i32, i32
  }
  func.func @transform_1(%arg0: i32) -> (i32, i32) {
    %c0_i32 = arith.constant 0 : i32
    %c0_i32_0 = arith.constant 0 : i32
    return %arg0, %c0_i32 : i32, i32
  }
  func.func @transform_2(%arg0: i32) -> (i32, i32) {
    %c0_i32 = arith.constant 0 : i32
    %c0_i32_0 = arith.constant 0 : i32
    %c0_i32_1 = arith.constant 0 : i32
    return %c0_i32, %c0_i32_0 : i32, i32
  }
  func.func @transform_3(%arg0: i32) -> (i32, i32) {
    %c0_i32 = arith.constant 0 : i32
    %c0_i32_0 = arith.constant 0 : i32
    %c0_i32_1 = arith.constant 0 : i32
    return %c0_i32, %c0_i32_0 : i32, i32
  }
  func.func @transform_4(%arg0: i32) -> (i32, i32) {
    %c0_i32 = arith.constant 0 : i32
    %c0_i32_0 = arith.constant 0 : i32
    %c0_i32_1 = arith.constant 0 : i32
    return %c0_i32, %c0_i32_0 : i32, i32
  }
  func.func @transform_5(%arg0: i32) -> (i32, i32) {
    %c0_i32 = arith.constant 0 : i32
    %c0_i32_0 = arith.constant 0 : i32
    %c0_i32_1 = arith.constant 0 : i32
    return %c0_i32, %c0_i32_0 : i32, i32
  }
  func.func @transform_6(%arg0: i32) -> (i32, i32) {
    %c0_i32 = arith.constant 0 : i32
    %c0_i32_0 = arith.constant 0 : i32
    %c0_i32_1 = arith.constant 0 : i32
    return %c0_i32, %c0_i32_0 : i32, i32
  }
  func.func @transform_7(%arg0: i32) -> (i32, i32) {
    %c0_i32 = arith.constant 0 : i32
    %c0_i32_0 = arith.constant 0 : i32
    %c0_i32_1 = arith.constant 0 : i32
    return %c0_i32, %c0_i32_0 : i32, i32
  }
  func.func @transform_8(%arg0: i32) -> (i32, i32) {
    %c0_i32 = arith.constant 0 : i32
    %c0_i32_0 = arith.constant 0 : i32
    %c0_i32_1 = arith.constant 0 : i32
    return %c0_i32, %c0_i32_0 : i32, i32
  }
  func.func @transform_9(%arg0: i32) -> (i32, i32) {
    %c0_i32 = arith.constant 0 : i32
    %c0_i32_0 = arith.constant 0 : i32
    return %arg0, %c0_i32 : i32, i32
  }
}

</mosaic_0001>

<bundles_post_ra>
// kernel: tpu_custom_call.1
= control target key start
LH: loop header
LB: loop body
LE: loop exit
PB: predicated region body
PF: predicated region fallthrough
CT: control target
= control target key end

     0   :  { %14 = vsyncpa [#allocation3], 0  ;;  %s504_s0 = inlined_call_operand.vmem [shape: f32[16,8], index: 0, kind: input, shape index: {}]   ;;  %s505_s1 = inlined_call_operand.vmem [shape: f32[16,4], index: 1, kind: input, shape index: {}]   ;;  %s506_s2 = inlined_call_operand.vmem [shape: f32[8,32], index: 2, kind: input, shape index: {}]   ;;  %s507_s3 = inlined_call_operand.hbm [shape: f32[4,32], index: 3, kind: input, shape index: {}]   ;;  %s508_s4 = inlined_call_operand.vmem [shape: f32[1,32], index: 4, kind: input, shape index: {}]   ;;  %s509_s5 = inlined_call_operand.vmem [shape: f32[32,32], index: 5, kind: input, shape index: {}]   ;;  %s510_s6 = inlined_call_operand.vmem [shape: f32[1,32], index: 6, kind: input, shape index: {}]   ;;  %s511_s7 = inlined_call_operand.hbm [shape: f32[32,128], index: 7, kind: input, shape index: {}]   ;;  %s512_s8 = inlined_call_operand.vmem [shape: f32[1,128], index: 8, kind: input, shape index: {}]   ;;  %s513_s9 = inlined_call_operand.hbm [shape: f32[16,128], index: 9, kind: output, shape index: {}]  }
   0x1   :  { %15 = vsyncpa [#allocation6], 0 }
   0x2   :  { %16 = vsyncpa [#allocation4], 0  ;;  %s28_s11 = sshll.u32 %s507_s3, 4  ;;  %s392_s12 = smov [#allocation2]   ;;  %s29_s11 = int_to_ptr.hbm [resolvable:$true] %s28_s11 }
   0x3   :  { %s30_s13 = sshll.u32 %s392_s12, 4  ;;  %s44_s16 = sshll.u32 %s511_s7, 4  ;;  %s31_s13 = int_to_ptr.vmem [resolvable:$true] %s30_s13  ;;  %s45_s16 = int_to_ptr.hbm [resolvable:$true] %s44_s16 }
   0x4   :  { %33 = dma.hbm_to_vmem [thread:$0]  %s29_s11, 64, %s31_s13, [#allocation3]  }
   0x5   :  { %s393_s17 = smov [#allocation5]   ;;  %s394_s19 = smov 128  }
   0x6   :  { %s46_s18 = sshll.u32 %s393_s17, 4  ;;  %s395_s20 = smov 8   ;;  %s47_s18 = int_to_ptr.vmem [resolvable:$true] %s46_s18 }
   0x7   :  { %52 = dma.hbm_to_vmem [thread:$0]  %s45_s16, 512, %s47_s18, [#allocation6], %s394_s19, %s394_s19, %s395_s20  }
   0x8   :  { %386 = dma.done.wait [#allocation3], 64  }
   0x9   :  { %387 = vsyncadd [#allocation3], 4294967232 }
   0xa   :  { %388 = dma.done.wait [#allocation6], 512  }
   0xb   :  { %389 = vsyncadd [#allocation6], 4294966784  ;;  %vm76_vm0 = vcmask 1043456   ;;  %vm69_vm1 = vcmask 31744   ;;  %vm103_vm2 = vcmask 64512   ;;  %v65_v1 = vld [vmem:[%s506_s2] sm:$0xff]  ;;  %v216_v49 = vlaneseq }
   0xc   :  { %v68_v0 = vld [vmem:[#allocation2] sm:$0xf]  ;;  %125 = vmatpush.msra.mxu1 %v65_v1  ;;  %v67_v4 = vld [vmem:[%s505_s1 + $0x8] sm:$0xff]  ;;  %v144_v6 = vld [vmem:[%s509_s5 + $0x18] sm:$0xff]  ;;  %vm149_vm3 = vcmask 261120   ;;  %s273_s3 = sshll.u32 %s513_s9, 4  ;;  %s274_s3 = int_to_ptr.hbm [resolvable:$true] %s273_s3 }
   0xd   :  { %v66_v2 = vld [vmem:[%s505_s1] sm:$0xff]  ;;  %287 = vmatpush.msk.msra.mxu0 %vm76_vm0, %v68_v0  ;;  %v64_v5 = vld [vmem:[%s504_s0 + $0x8] sm:$0xff]  ;;  %168 = vmatpush.msra.mxu2 %v144_v6  ;;  %v143_v7 = vld [vmem:[%s509_s5 + $0x10] sm:$0xff]  ;;  %v217_v56 = vand.u32 127, %v216_v49 }
   0xe   :  { %v63_v3 = vld [vmem:[%s504_s0] sm:$0xff]  ;;  %288 = vmatmul.msk.f32.vlgmr.msra.gmra.mxu0 %vm69_vm1, %v66_v2  ;;  %v142_v8 = vld [vmem:[%s509_s5 + $0x8] sm:$0xff]  ;;  %v181_v11 = vld [vmem:[#allocation5 + $0x10] sm:$0xff] }
   0xf   :  { %290 = vmatmul.msk.f32.vlgmr.msra.gmra.mxu1 %vm103_vm2, %v63_v3  ;;  %169 = vmatpush.msra.mxu2 %v143_v7  ;;  %v141_v9 = vld [vmem:[%s509_s5] sm:$0xff]  ;;  %v180_v23 = vld [vmem:[#allocation5 + $0x8] sm:$0xff]  ;;  %vm262_vm6 = vcmp.lt.s32.totalorder %v217_v56, 8 }
  0x10   :  { %v182_v10 = vld [vmem:[#allocation5 + $0x18] sm:$0xff]  ;;  %v179_v24 = vld [vmem:[#allocation5] sm:$0xff] }
  0x11   :  { %170 = vmatpush.msra.mxu2 %v142_v8  ;;  %205 = vmatpush.msra.mxu3 %v182_v10  ;;  %v303_v12 = vld [vmem:[%s508_s4] ss:$0 sm:$0xff] }
  0x12   :  { %v304_v25 = vld [vmem:[%s510_s6] ss:$0 sm:$0xff]  ;;  %s396_s6 = smov [#allocation7]  }
  0x13   :  { %171 = vmatpush.msra.mxu2 %v141_v9  ;;  %206 = vmatpush.msra.mxu3 %v181_v11  ;;  %v305_v30 = vld [vmem:[%s512_s8] ss:$0 sm:$0xff]  ;;  %s271_s8 = sshll.u32 %s396_s6, 4  ;;  %s272_s8 = int_to_ptr.vmem [resolvable:$true] %s271_s8 }
  0x15   :  { %207 = vmatpush.msra.mxu3 %v180_v23 }
  0x16   :  { %289 = vmatmul.msk.f32.gmra.mxu0 %vm69_vm1, %v67_v4 }
  0x17   :  { %291 = vmatmul.msk.f32.gmra.mxu1 %vm103_vm2, %v64_v5  ;;  %208 = vmatpush.msra.mxu3 %v179_v24 }
  0x8b   :  { %v97_v13 = vpop.f32.mrf.mxu0 }
  0x8c   :  { %v127_v14 = vpop.f32.mrf.mxu1 }
  0x8d   :  { %v128_v15 = vadd.f32 %v127_v14, %v97_v13 }
  0x8f   :  { %v137_v16 = vadd.f32 %v303_v12, %v128_v15 }
  0x91   :  { %v139_v17 = vmax.f32 %v137_v16, 0.0 }
  0x93   :  { %292 = vmatmul.msk.f32.vlgmr.msra.gmra.mxu2 %vm149_vm3, %v139_v17  ;;  %v100_v18 = vpop.f32.mrf.mxu0 }
  0x94   :  { %v130_v19 = vpop.f32.mrf.mxu1 }
  0x95   :  { %v131_v20 = vadd.f32 %v130_v19, %v100_v18 }
  0x97   :  { %v138_v21 = vadd.f32 %v303_v12, %v131_v20 }
  0x99   :  { %v140_v22 = vmax.f32 %v138_v21, 0.0 }
  0x9b   :  { %293 = vmatmul.msk.f32.gmra.mxu2 %vm149_vm3, %v140_v22 }
 0x116   :  { %v173_v26 = vpop.f32.mrf.mxu2 }
 0x117   :  { %v174_v27 = vadd.f32 %v304_v25, %v173_v26 }
 0x119   :  { %294 = vmatmul.msk.f32.vlgmr.msra.gmra.mxu3 %vm149_vm3, %v174_v27 }
 0x11e   :  { %v176_v28 = vpop.f32.mrf.mxu2 }
 0x11f   :  { %v177_v29 = vadd.f32 %v304_v25, %v176_v28 }
 0x121   :  { %295 = vmatmul.msk.f32.gmra.mxu3 %vm149_vm3, %v177_v29 }
 0x19c   :  { %v210_v31 = vpop.f32.mrf.mxu3 }
 0x19d   :  { %v211_v32 = vadd.f32 %v305_v30, %v210_v31 }
 0x19f   :  { %v228_v33 = vand.u32 2147483647, %v211_v32  ;;  %v222_v53 = vmax.f32 %v211_v32, 0.0  ;;  %vm224_vm5 = vcmp.ne.f32.partialorder %v211_v32, %v211_v32  ;;  %v296_v0 = vclamps-f32 %v211_v32, 1000.0 }
 0x1a1   :  { %v230_v34 = vsub.f32 0.0, %v228_v33 }
 0x1a3   :  { %v232_v35 = vmul.f32 1.442695, %v230_v34 }
 0x1a4   :  { %v213_v36 = vpop.f32.mrf.mxu3 }
 0x1a5   :  { %306 = vpow2.f32 %v232_v35  ;;  %v214_v37 = vadd.f32 %v305_v30, %v213_v36 }
 0x1a7   :  { %v229_v38 = vand.u32 2147483647, %v214_v37  ;;  %v223_v2 = vmax.f32 %v214_v37, 0.0  ;;  %vm225_vm8 = vcmp.ne.f32.partialorder %v214_v37, %v214_v37  ;;  %v297_v8 = vclamps-f32 %v214_v37, 1000.0 }
 0x1a9   :  { %v231_v39 = vsub.f32 0.0, %v229_v38 }
 0x1ab   :  { %v307_v40 = vpop.eup %306  ;;  %v234_v41 = vmul.f32 1.442695, %v231_v39 }
 0x1ac   :  { %v236_v42 = vadd.f32 1.0, %v307_v40  ;;  %v239_v43 = vmul.f32 -0.5, %v307_v40  ;;  %v242_v45 = vand.u32 2147483647, %v307_v40 }
 0x1ad   :  { %308 = vpow2.f32 %v234_v41 }
 0x1ae   :  { %310 = vlog2.f32 %v236_v42  ;;  %v240_v44 = vadd.f32 1.0, %v239_v43  ;;  %vm243_vm4 = vcmp.lt.f32.partialorder %v242_v45, 0.0004427343 }
 0x1b0   :  { %v241_v51 = vmul.f32 %v307_v40, %v240_v44 }
 0x1b3   :  { %v309_v46 = vpop.eup %308 }
 0x1b4   :  { %v311_v47 = vpop.eup %310  ;;  %v245_v48 = vadd.f32 1.0, %v309_v46  ;;  %v248_v52 = vmul.f32 -0.5, %v309_v46  ;;  %v251_v58 = vand.u32 2147483647, %v309_v46 }
 0x1b5   :  { %v238_v50 = vmul.f32 0.6931472, %v311_v47 }
 0x1b6   :  { %312 = vlog2.f32 %v245_v48  ;;  %v249_v57 = vadd.f32 1.0, %v248_v52  ;;  %vm252_vm7 = vcmp.lt.f32.partialorder %v251_v58, 0.0004427343 }
 0x1b7   :  { %v244_v54 = vsel %vm243_vm4, %v241_v51, %v238_v50 }
 0x1b8   :  { %v254_v55 = vadd.f32 %v244_v54, %v222_v53  ;;  %v250_v63 = vmul.f32 %v309_v46, %v249_v57 }
 0x1ba   :  { %v256_v59 = vsel %vm224_vm5, %v211_v32, %v254_v55 }
 0x1bb   :  { %v258_v60 = vmax.f32 %v256_v59, 1e-06 }
 0x1bc   :  { %v313_v61 = vpop.eup %312 }
 0x1bd   :  { %v247_v62 = vmul.f32 0.6931472, %v313_v61  ;;  %v260_v1 = vmin.f32 %v258_v60, 1.0 }
 0x1bf   :  { %v253_v3 = vsel %vm252_vm7, %v250_v63, %v247_v62  ;;  %v263_v4 = vsel %vm262_vm6, %v296_v0, %v260_v1 }
 0x1c0   :  { %v255_v5 = vadd.f32 %v253_v3, %v223_v2  ;;  %265 = vst [vmem:[#allocation7] sm:$0xff] %v263_v4 }
 0x1c2   :  { %v257_v6 = vsel %vm225_vm8, %v214_v37, %v255_v5 }
 0x1c3   :  { %v259_v7 = vmax.f32 %v257_v6, 1e-06 }
 0x1c5   :  { %v261_v9 = vmin.f32 %v259_v7, 1.0 }
 0x1c7   :  { %v264_v10 = vsel %vm262_vm6, %v297_v8, %v261_v9 }
 0x1c8   :  { %266 = vst [vmem:[#allocation7 + $0x8] sm:$0xff] %v264_v10 }
 0x1c9   :  { %279 = dma.vmem_to_hbm [thread:$0]  %s272_s8, 256, %s274_s3, [#allocation4], %s394_s19, %s394_s19, %s395_s20  }
 0x1ca   :  { %390 = dma.done.wait [#allocation4], 256  }
 0x1cb   :  { %391 = vsyncadd [#allocation4], 4294967040 }
 0x1cc   :  { %284 = vsyncpa [#allocation3], 1 }
 0x1cd   :  { %285 = vsyncpa [#allocation6], 1 }
 0x1ce   :  { %286 = vsyncpa [#allocation4], 1 }

</bundles_post_ra>
